<compile_context>
chip_gen: v7x
topology: tpu7x:2x2x1
jax: 0.10.0
libtpu: 0.0.40
codegen_flags: <defaults>
</compile_context>

<pallas_src>
import jax
import jax.numpy as jnp
from jax.experimental import pallas as pl
from jax.experimental.pallas import tpu as pltpu


def _make_kernel(K, dilation, Mb, Mv, Lp):
    def kernel(x_ref, w_ref, b_ref, o_ref):
        # x_ref: (Mb, Wp*C_in) bf16 -- Nb padded images stacked along rows
        # w_ref: (Wp*C_in, K*Lp) bf16 -- shifted-block-diagonal weights, tap kh in
        #                                lanes [kh*Lp, (kh+1)*Lp)
        # b_ref: (1, Lp) f32          -- bias tiled over output columns
        # o_ref: (Mb, Lp) f32
        # Single wide MXU dot over all rows and all K taps' output lanes.
        part = jnp.dot(x_ref[...], w_ref[...], preferred_element_type=jnp.float32)
        # kh row shift applied on the f32 result: lane slices are 128-aligned,
        # sublane offsets are the small kh*dilation shifts.
        acc = part[0:Mv, 0:Lp]
        for kh in range(1, K):
            s = kh * dilation
            acc = acc + part[s:s + Mv, kh * Lp:(kh + 1) * Lp]
        y = acc + b_ref[...]                    # f32 bias (broadcast over rows)
        y = jnp.where(y > 0.0, y, 0.2 * y)      # LeakyReLU(0.2)
        o_ref[0:Mv, :] = y.astype(o_ref.dtype)
        if Mv < Mb:                             # trailing rows are discarded by wrapper
            o_ref[Mv:Mb, :] = jnp.zeros((Mb - Mv, Lp), o_ref.dtype)
    return kernel


def _pick_images_per_block(N, Hp, max_rows=512):
    """Images per grid step.

    Grows the MXU M dimension (Nb*Hp stacked rows per dot) toward 128-512 rows while
    keeping the row block either a multiple of 8 sublanes or the whole batch (the
    BlockSpec (8,128) rule), and bounding per-step VMEM.  At tiny batches this collapses
    the grid to one block (whole batch): per the review, at these shapes the per-step
    overhead and MXU M matter more than keeping a second v7x TensorCore busy.
    """
    divisors = [d for d in range(1, N + 1) if N % d == 0]
    ok = [d for d in divisors if d == N or (d * Hp) % 8 == 0]
    small = [d for d in ok if d * Hp <= max_rows]
    return max(small) if small else min(ok)


def make_conv_block(weight, bias, *, image_hw, stride=1, dilation=1):
    """Build a jitted forward for ConvBlock(ReflectionPad2d + Conv2d + LeakyReLU(0.2)).

    All weight preprocessing (shifted-block-diagonal slab, tiled bias row) is hoisted
    here so it runs once per parameter set, not per forward (review item).
    """
    C_out, C_in, K, K2 = weight.shape
    assert K == K2
    assert stride == 1, "Pallas path implemented for stride=1 (module config)"
    # TODO(synk): stride > 1 needs strided row selection in the M dimension.
    H, W = image_hw
    pad = (K + (K - 1) * (dilation - 1) - 1) // 2
    eff_k = (K - 1) * dilation + 1
    Hp, Wp = H + 2 * pad, W + 2 * pad
    Ho, Wo = Hp - eff_k + 1, Wp - eff_k + 1
    Cd = Wp * C_in
    L = Wo * C_out
    Lp = ((L + 127) // 128) * 128

    # ---- hoisted parameter prep (runs once) ----
    # Shifted-block-diagonal weights:
    #   w_full[kh, wi*C_in + c, wo*C_out + o] = weight[o, c, kh, kw]  iff wi == wo + kw*dil
    wi = jnp.arange(Wp)[:, None, None]
    wo = jnp.arange(Wo)[None, :, None]
    kw = jnp.arange(K)[None, None, :]
    sel = (wi == wo * stride + kw * dilation).astype(jnp.float32)      # (Wp, Wo, K)
    w_t = jnp.transpose(weight, (2, 3, 1, 0)).astype(jnp.float32)      # (kh, kw, c, o)
    w_full = jnp.einsum("pqk,hkco->hpcqo", sel, w_t).reshape(K, Cd, L)
    if Lp != L:  # lane-dense padded output columns (zero weights -> zero outputs)
        w_full = jnp.pad(w_full, ((0, 0), (0, 0), (0, Lp - L)))
    # tap kh -> lanes [kh*Lp, (kh+1)*Lp): one wide MXU dot in the kernel.  bf16 weights.
    w_cat = jnp.transpose(w_full, (1, 0, 2)).reshape(Cd, K * Lp).astype(jnp.bfloat16)

    b_row = jnp.tile(bias.astype(jnp.float32), Wo)
    if Lp != L:
        b_row = jnp.pad(b_row, (0, Lp - L))
    b_row = b_row.reshape(1, Lp)                                        # f32 bias row

    def forward(x):
        N = x.shape[0]
        assert x.shape == (N, C_in, H, W), x.shape
        Nb = _pick_images_per_block(N, Hp)
        Mb, G = Nb * Hp, N // Nb
        Mv = Mb - (eff_k - 1)          # rows for which all kh source rows exist

        # TODO(synk): keep activations NHWC between ConvBlocks to drop these passes.
        x_nhwc = jnp.transpose(x, (0, 2, 3, 1))
        x_pad = jnp.pad(x_nhwc, ((0, 0), (pad, pad), (pad, pad), (0, 0)), mode="reflect")
        x2 = x_pad.reshape(N * Hp, Cd).astype(jnp.bfloat16)

        cost = pl.CostEstimate(
            flops=2 * (N * Hp) * Cd * (K * Lp),
            transcendentals=0,
            bytes_accessed=x2.size * 2 + w_cat.size * 2 + b_row.size * 4
                           + (N * Hp) * Lp * 4,
        )

        out = pl.pallas_call(
            _make_kernel(K, dilation, Mb, Mv, Lp),
            out_shape=jax.ShapeDtypeStruct((N * Hp, Lp), jnp.float32),
            grid=(G,),
            in_specs=[
                pl.BlockSpec((Mb, Cd), lambda i: (i, 0)),
                # constant index maps: weight slab + bias stay resident across steps
                pl.BlockSpec((Cd, K * Lp), lambda i: (0, 0)),
                pl.BlockSpec((1, Lp), lambda i: (0, 0)),
            ],
            out_specs=pl.BlockSpec((Mb, Lp), lambda i: (i, 0)),
            compiler_params=pltpu.CompilerParams(
                dimension_semantics=("parallel",)),
            cost_estimate=cost,
        )(x2, w_cat, b_row)

        # (N*Hp, Lp) -> (N, C_out, Ho, Wo)   (module contract is NCHW)
        out = out.reshape(N, Hp, Lp)[:, :Ho, :L].reshape(N, Ho, Wo, C_out)
        return jnp.transpose(out, (0, 3, 1, 2))

    return jax.jit(forward)


def _reference(x, weight, bias, *, kernel_size=3, stride=1, dilation=1):
    # Pure-JAX reference for correctness check (ReflectionPad2d + Conv2d + LeakyReLU).
    K = kernel_size
    pad = (K + (K - 1) * (dilation - 1) - 1) // 2
    x_pad = jnp.pad(x, ((0, 0), (0, 0), (pad, pad), (pad, pad)), mode="reflect")
    y = jax.lax.conv_general_dilated(
        x_pad, weight, window_strides=(stride, stride), padding="VALID",
        rhs_dilation=(dilation, dilation),
        dimension_numbers=("NCHW", "OIHW", "NCHW"))
    y = y + bias.reshape(1, -1, 1, 1)
    return jnp.where(y > 0, y, 0.2 * y)


if __name__ == "__main__":
    key = jax.random.PRNGKey(0)
    k_x, k_w, k_b = jax.random.split(key, 3)

    N, C_in, H, W = 2, 4, 16, 16
    C_out, K = 8, 3

    x = jax.random.normal(k_x, (N, C_in, H, W), dtype=jnp.float32)
    weight = jax.random.normal(k_w, (C_out, C_in, K, K), dtype=jnp.float32) * 0.1
    bias = jax.random.normal(k_b, (C_out,), dtype=jnp.float32) * 0.1

    fwd = make_conv_block(weight, bias, image_hw=(H, W), stride=1, dilation=1)
    out = jax.block_until_ready(fwd(x))
    assert out.shape == (N, C_out, H, W), out.shape

    # Reference evaluated on the same bf16-rounded inputs (kernel: bf16 MXU, f32 accum).
    xb = x.astype(jnp.bfloat16).astype(jnp.float32)
    wb = weight.astype(jnp.bfloat16).astype(jnp.float32)
    ref = _reference(xb, wb, bias, kernel_size=K, stride=1, dilation=1)
    assert jnp.allclose(out, ref, atol=1e-3, rtol=1e-3), "mismatch vs reference"

    # Also exercise the Lp-padding (Wo*C_out < 128) and dilation>1 paths (review concern).
    for (Hc, Wc, dil) in [(16, 12, 1), (16, 16, 2)]:
        xc = jax.random.normal(k_x, (N, C_in, Hc, Wc), dtype=jnp.float32)
        fwd_c = make_conv_block(weight, bias, image_hw=(Hc, Wc), stride=1, dilation=dil)
        oc = jax.block_until_ready(fwd_c(xc))
        rc = _reference(xc.astype(jnp.bfloat16).astype(jnp.float32), wb, bias,
                        kernel_size=K, stride=1, dilation=dil)
        assert oc.shape == rc.shape, (oc.shape, rc.shape)
        assert jnp.allclose(oc, rc, atol=1e-3, rtol=1e-3), ("mismatch", Hc, Wc, dil)

    print("KERNEL_OK")
</pallas_src>

<mosaic_0001>
module attributes {stable_mosaic.version = 11 : i64} {
  func.func @kernel(%arg0: i32, %arg1: memref<36x72xbf16, #tpu.memory_space<vmem>>, %arg2: memref<72x384xbf16, #tpu.memory_space<vmem>>, %arg3: memref<1x128xf32, #tpu.memory_space<vmem>>, %arg4: memref<36x128xf32, #tpu.memory_space<vmem>>) attributes {dimension_semantics = [#tpu.dimension_semantics<parallel>], iteration_bounds = array<i64: 1>, scalar_prefetch = 0 : i64, scratch_operands = 0 : i64, tpu.core_type = #tpu.core_type<tc>, window_params = [{transform_indices = @transform_0, window_bounds = array<i64: 36, 72>}, {pipeline_mode = #tpu.pipeline_mode<synchronous>, transform_indices = @transform_1, window_bounds = array<i64: 72, 384>}, {pipeline_mode = #tpu.pipeline_mode<synchronous>, transform_indices = @transform_2, window_bounds = array<i64: 1, 128>}, {transform_indices = @transform_3, window_bounds = array<i64: 36, 128>}]} {
    %c0 = arith.constant 0 : index
    %c0_0 = arith.constant 0 : index
    %0 = vector.load %arg1[%c0, %c0_0] : memref<36x72xbf16, #tpu.memory_space<vmem>>, vector<36x72xbf16>
    %c0_1 = arith.constant 0 : index
    %c0_2 = arith.constant 0 : index
    %1 = vector.load %arg2[%c0_1, %c0_2] : memref<72x384xbf16, #tpu.memory_space<vmem>>, vector<72x384xbf16>
    %cst = arith.constant dense<0.000000e+00> : vector<36x384xf32>
    %2 = tpu.matmul %0, %1, %cst {dimension_numbers = #tpu.dot_dimension_numbers<[1], [0], [0], [1], [0, 0, 1, 1], [], []>} : vector<36x72xbf16>, vector<72x384xbf16>, vector<36x384xf32> -> vector<36x384xf32>
    %3 = vector.extract_strided_slice %2 {offsets = [0, 0], sizes = [34, 128], strides = [1, 1]} : vector<36x384xf32> to vector<34x128xf32>
    %4 = vector.extract_strided_slice %2 {offsets = [1, 128], sizes = [34, 128], strides = [1, 1]} : vector<36x384xf32> to vector<34x128xf32>
    %5 = arith.addf %3, %4 : vector<34x128xf32>
    %6 = vector.extract_strided_slice %2 {offsets = [2, 256], sizes = [34, 128], strides = [1, 1]} : vector<36x384xf32> to vector<34x128xf32>
    %7 = arith.addf %5, %6 : vector<34x128xf32>
    %c0_3 = arith.constant 0 : index
    %c0_4 = arith.constant 0 : index
    %8 = vector.load %arg3[%c0_3, %c0_4] : memref<1x128xf32, #tpu.memory_space<vmem>>, vector<1x128xf32>
    %9 = vector.broadcast %8 : vector<1x128xf32> to vector<34x128xf32>
    %10 = arith.addf %7, %9 : vector<34x128xf32>
    %cst_5 = arith.constant 0.000000e+00 : f32
    %11 = vector.broadcast %cst_5 : f32 to vector<34x128xf32>
    %12 = arith.cmpf ogt, %10, %11 : vector<34x128xf32>
    %cst_6 = arith.constant 2.000000e-01 : f32
    %13 = vector.broadcast %cst_6 : f32 to vector<34x128xf32>
    %14 = arith.mulf %13, %10 : vector<34x128xf32>
    %15 = arith.select %12, %10, %14 : vector<34x128xi1>, vector<34x128xf32>
    %c0_7 = arith.constant 0 : index
    %c0_8 = arith.constant 0 : index
    %16 = vector.load %arg4[%c0_7, %c0_8] : memref<36x128xf32, #tpu.memory_space<vmem>>, vector<34x128xf32>
    tpu.vector_store %arg4[%c0_7, %c0_8], %15 {strides = array<i32>} : memref<36x128xf32, #tpu.memory_space<vmem>>, vector<34x128xf32>,
    %cst_9 = arith.constant 0.000000e+00 : f32
    %17 = vector.broadcast %cst_9 : f32 to vector<2x128xf32>
    %c34 = arith.constant 34 : index
    %c0_10 = arith.constant 0 : index
    %18 = vector.load %arg4[%c34, %c0_10] : memref<36x128xf32, #tpu.memory_space<vmem>>, vector<2x128xf32>
    tpu.vector_store %arg4[%c34, %c0_10], %17 {strides = array<i32>} : memref<36x128xf32, #tpu.memory_space<vmem>>, vector<2x128xf32>,
    return
  }
  func.func @transform_0(%arg0: i32) -> (i32, i32) {
    %c0_i32 = arith.constant 0 : i32
    %c0_i32_0 = arith.constant 0 : i32
    return %arg0, %c0_i32 : i32, i32
  }
  func.func @transform_1(%arg0: i32) -> (i32, i32) {
    %c0_i32 = arith.constant 0 : i32
    %c0_i32_0 = arith.constant 0 : i32
    %c0_i32_1 = arith.constant 0 : i32
    return %c0_i32, %c0_i32_0 : i32, i32
  }
  func.func @transform_2(%arg0: i32) -> (i32, i32) {
    %c0_i32 = arith.constant 0 : i32
    %c0_i32_0 = arith.constant 0 : i32
    %c0_i32_1 = arith.constant 0 : i32
    return %c0_i32, %c0_i32_0 : i32, i32
  }
  func.func @transform_3(%arg0: i32) -> (i32, i32) {
    %c0_i32 = arith.constant 0 : i32
    %c0_i32_0 = arith.constant 0 : i32
    return %arg0, %c0_i32 : i32, i32
  }
}

</mosaic_0001>

<bundles_post_ra>
// kernel: forward.1
= control target key start
LH: loop header
LB: loop body
LE: loop exit
PB: predicated region body
PF: predicated region fallthrough
CT: control target
= control target key end

     0   :  { %v428_v0 = vmov 0.0   ;;  %vm429_vm0 = vmmov 0   ;;  %v430_v3 = vmov 0   ;;  %vm133_vm1 = vcmask 1043456   ;;  %s534_s1 = inlined_call_operand.vmem [shape: bf16[72,384], index: 1, kind: input, shape index: {}]   ;;  %s535_s0 = inlined_call_operand.vmem [shape: bf16[36,72], index: 0, kind: input, shape index: {}]   ;;  %s536_s3 = inlined_call_operand.vmem [shape: f32[36,128], index: 3, kind: output, shape index: {}]   ;;  %s537_s2 = inlined_call_operand.vmem [shape: f32[1,128], index: 2, kind: input, shape index: {}]  }
   0x1   :  { %381 = vmatprep.subr.bf16.mxu1 %v428_v0  ;;  %v406_v1 = vld [vmem:[%s534_s1 + $0x4] ss:$12 sps:$4 sm:$0xff]   ;;  %391 = vmatprep.mubr.msk.bf16.mxu1 %vm429_vm0, %v428_v0  ;;  %v408_v2 = vld [vmem:[%s534_s1 + $0x8] ss:$12 sps:$4 sm:$0xff]   ;;  %v409_v4 = vld [vmem:[%s534_s1] ss:$12 sps:$4 sm:$0xff]  }
   0x2   :  { %175 = vmatprep.mubr.bf16.mxu0 %v430_v3  ;;  %143 = vmatprep.subr.bf16.mxu0 %v406_v1  ;;  %v410_v5 = vld [vmem:[%s534_s1 + $0x1c] ss:$12 sps:$4 sm:$0xff]   ;;  %v412_v6 = vld [vmem:[%s534_s1 + $0x20] ss:$12 sps:$4 sm:$0xff]   ;;  %v413_v7 = vld [vmem:[%s534_s1 + $0x18] ss:$12 sps:$4 sm:$0xff]  }
   0x3   :  { %382 = vmatpush3.bf16.msra.mxu1 %v408_v2  ;;  %144 = vmatpush1.bf16.msra.mxu0 %v409_v4  ;;  %v414_v8 = vld [vmem:[%s534_s1 + $0x34] ss:$12 sps:$4 sm:$0xff]   ;;  %v416_v9 = vld [vmem:[%s534_s1 + $0x38] ss:$12 sps:$4 sm:$0xff]   ;;  %v417_v10 = vld [vmem:[%s534_s1 + $0x30] ss:$12 sps:$4 sm:$0xff]  }
   0x4   :  { %383 = vmatprep.subr.bf16.mxu1 %v428_v0  ;;  %145 = vmatprep.subr.bf16.mxu0 %v410_v5  ;;  %v418_v11 = vld [vmem:[%s534_s1 + $0x4c] ss:$12 sps:$4 sm:$0xff]   ;;  %v36_v12 = vld [vmem:[%s534_s1 + $0x60] sm:$0xff]  ;;  %v420_v13 = vld [vmem:[%s534_s1 + $0x50] ss:$12 sps:$4 sm:$0xff]   ;;  %vm123_vm2 = vcmask 588800  }
   0x5   :  { %v421_v14 = vld [vmem:[%s534_s1 + $0x48] ss:$12 sps:$4 sm:$0xff]   ;;  %v363_v16 = vcombine.high %v36_v12, %v36_v12  ;;  %v362_v17 = vcombine.low %v36_v12, %v36_v12  ;;  %v425_v20 = vld [vmem:[%s535_s0] sm:$0xff]   ;;  %v427_v22 = vld [vmem:[%s535_s0 + $0x10] ss:$0 sps:$4 sm:$0x33]  }
   0x6   :  { %v423_v15 = vld [vmem:[%s534_s1 + $0x68] ss:$0 sps:$4 sm:$0xff]   ;;  %342 = vst [vmem:[%s536_s3 + $0x22] sm:$0x3] %v428_v0  ;;  %vm290_vm3 = vcmask 1045504   ;;  %vm265_vm4 = vcmask 1046528  }
   0x7   :  { %384 = vmatpush3.bf16.msra.mxu1 %v412_v6  ;;  %146 = vmatpush1.bf16.msra.mxu0 %v413_v7  ;;  %v141_v18 = vsel %vm133_vm1, %v423_v15, 0  ;;  %v135_v19 = vsel %vm133_vm1, %v362_v17, 0  ;;  %v426_v21 = vld [vmem:[%s535_s0 + $0x8] sm:$0xff]   ;;  %v372_v39 = vld [vmem:[%s537_s2] ss:$0 sm:$0xff] }
   0x8   :  { %385 = vmatprep.subr.bf16.mxu1 %v428_v0  ;;  %147 = vmatprep.subr.bf16.mxu0 %v414_v8 }
   0xb   :  { %386 = vmatpush3.bf16.msra.mxu1 %v416_v9  ;;  %148 = vmatpush1.bf16.msra.mxu0 %v417_v10 }
   0xc   :  { %387 = vmatprep.subr.bf16.mxu1 %v428_v0  ;;  %149 = vmatprep.subr.bf16.mxu0 %v418_v11 }
   0xf   :  { %388 = vmatpush3.bf16.msra.mxu1 %v420_v13  ;;  %150 = vmatpush1.bf16.msra.mxu0 %v421_v14 }
  0x10   :  { %389 = vmatprep.subr.bf16.mxu1 %v428_v0  ;;  %365 = vmatprep.subr.msk.bf16.mxu0 %vm133_vm1, %v363_v16 }
  0x13   :  { %390 = vmatpush3.bf16.msra.mxu1 %v141_v18  ;;  %152 = vmatpush1.bf16.msra.mxu0 %v135_v19 }
  0x16   :  { %392 = vmatmul.mubr.msk.bf16.vlgmr.msra.gmra.mrb[0].mxu1 %vm123_vm2, %v425_v20  ;;  %366 = vmatmul.mubr.msk.bf16.vlgmr.msra.gmra.mrb[0].mxu0 %vm123_vm2, %v425_v20 }
  0x17   :  { %395 = vmatprep.mubr.msk.bf16.mxu1 %vm429_vm0, %v428_v0  ;;  %185 = vmatprep.mubr.bf16.mxu0 %v430_v3 }
  0x1e   :  { %396 = vmatmul.mubr.msk.bf16.gmra.mrb[4].mxu1 %vm123_vm2, %v426_v21  ;;  %367 = vmatmul.mubr.msk.bf16.gmra.mrb[4].mxu0 %vm123_vm2, %v426_v21 }
  0x1f   :  { %399 = vmatprep.mubr.msk.bf16.mxu1 %vm429_vm0, %v428_v0  ;;  %195 = vmatprep.mubr.bf16.mxu0 %v430_v3 }
  0x26   :  { %400 = vmatmul.mubr.msk.bf16.gmra.mrb[8].mxu1 %vm123_vm2, %v427_v22  ;;  %368 = vmatmul.mubr.msk.bf16.gmra.mrb[8].mxu0 %vm123_vm2, %v427_v22 }
  0xe9   :  { %v238_v23 = vpop.f32.mrb[0].mxu1  ;;  %v177_v24 = vpop.f32.mrb[0].mxu0 }
  0xea   :  { %v291_v25 = vrot.slane %v238_v23, 2  ;;  %v393_v26 = vpop.f32.mrb[1].mxu1  ;;  %v179_v27 = vpop.f32.mrb[1].mxu0 }
  0xeb   :  { %v241_v28 = vpop.f32.mrb[2].mxu1  ;;  %v181_v29 = vpop.f32.mrb[2].mxu0  ;;  %v266_v33 = vrot.slane %v179_v27, 1 }
  0xec   :  { %v292_v30 = vrot.slane %v241_v28, 2  ;;  %v394_v31 = vpop.f32.mrb[3].mxu1  ;;  %v183_v32 = vpop.f32.mrb[3].mxu0 }
  0xed   :  { %v267_v35 = vrot.slane %v183_v32, 1 }
  0xee   :  { %v293_v34 = vsel %vm290_vm3, %v291_v25, %v292_v30 }
  0xef   :  { %v268_v36 = vsel %vm265_vm4, %v266_v33, %v267_v35 }
  0xf0   :  { %v280_v37 = vadd.f32 %v268_v36, %v177_v24 }
  0xf1   :  { %v246_v38 = vpop.f32.mrb[4].mxu1  ;;  %v187_v41 = vpop.f32.mrb[4].mxu0 }
  0xf2   :  { %v294_v40 = vrot.slane %v246_v38, 2  ;;  %v397_v42 = vpop.f32.mrb[5].mxu1  ;;  %v305_v43 = vadd.f32 %v293_v34, %v280_v37  ;;  %v189_v44 = vpop.f32.mrb[5].mxu0 }
  0xf3   :  { %v249_v45 = vpop.f32.mrb[6].mxu1  ;;  %v269_v47 = vrot.slane %v189_v44, 1  ;;  %v191_v48 = vpop.f32.mrb[6].mxu0 }
  0xf4   :  { %v295_v46 = vsel %vm290_vm3, %v292_v30, %v294_v40  ;;  %v296_v49 = vrot.slane %v249_v45, 2  ;;  %v398_v50 = vpop.f32.mrb[7].mxu1  ;;  %v317_v51 = vadd.f32 %v372_v39, %v305_v43  ;;  %v193_v52 = vpop.f32.mrb[7].mxu0 }
  0xf5   :  { %v270_v53 = vsel %vm265_vm4, %v267_v35, %v269_v47  ;;  %v271_v55 = vrot.slane %v193_v52, 1 }
  0xf6   :  { %v297_v54 = vsel %vm290_vm3, %v294_v40, %v296_v49  ;;  %vm322_vm5 = vcmp.gt.f32.partialorder %v317_v51, 0.0  ;;  %v327_v56 = vmul.f32 0.2, %v317_v51  ;;  %v281_v57 = vadd.f32 %v270_v53, %v181_v29 }
  0xf7   :  { %v272_v58 = vsel %vm265_vm4, %v269_v47, %v271_v55 }
  0xf8   :  { %v332_v59 = vsel %vm322_vm5, %v317_v51, %v327_v56  ;;  %v306_v60 = vadd.f32 %v295_v46, %v281_v57  ;;  %v282_v61 = vadd.f32 %v272_v58, %v187_v41 }
  0xf9   :  { %v254_v62 = vpop.f32.mrb[8].mxu1  ;;  %337 = vst [vmem:[%s536_s3] sm:$0xff] %v332_v59  ;;  %v197_v0 = vpop.f32.mrb[8].mxu0 }
  0xfa   :  { %v298_v63 = vrot.slane %v254_v62, 2  ;;  %v401_v1 = vpop.f32.mrb[9].mxu1  ;;  %v318_v2 = vadd.f32 %v372_v39, %v306_v60  ;;  %v307_v3 = vadd.f32 %v297_v54, %v282_v61  ;;  %v199_v4 = vpop.f32.mrb[9].mxu0 }
  0xfb   :  { %v257_v5 = vpop.f32.mrb[10].mxu1  ;;  %v273_v7 = vrot.slane %v199_v4, 1  ;;  %v201_v8 = vpop.f32.mrb[10].mxu0 }
  0xfc   :  { %v299_v6 = vsel %vm290_vm3, %v296_v49, %v298_v63  ;;  %v402_v9 = vpop.f32.mrb[11].mxu1  ;;  %vm323_vm6 = vcmp.gt.f32.partialorder %v318_v2, 0.0  ;;  %v328_v10 = vmul.f32 0.2, %v318_v2  ;;  %v319_v11 = vadd.f32 %v372_v39, %v307_v3  ;;  %v202_v12 = vpop.f32.mrb[11].mxu0 }
  0xfd   :  { %v274_v13 = vsel %vm265_vm4, %v271_v55, %v273_v7  ;;  %v284_v14 = vadd.f32 %v273_v7, %v197_v0 }
  0xfe   :  { %v333_v15 = vsel %vm323_vm6, %v318_v2, %v328_v10  ;;  %vm324_vm7 = vcmp.gt.f32.partialorder %v319_v11, 0.0  ;;  %v329_v16 = vmul.f32 0.2, %v319_v11  ;;  %v283_v17 = vadd.f32 %v274_v13, %v191_v48 }
  0xff   :  { %338 = vst [vmem:[%s536_s3 + $0x8] sm:$0xff] %v333_v15  ;;  %v309_v18 = vadd.f32 %v298_v63, %v284_v14 }
 0x100   :  { %v334_v19 = vsel %vm324_vm7, %v319_v11, %v329_v16  ;;  %v308_v20 = vadd.f32 %v299_v6, %v283_v17 }
 0x101   :  { %339 = vst [vmem:[%s536_s3 + $0x10] sm:$0xff] %v334_v19  ;;  %v321_v21 = vadd.f32 %v372_v39, %v309_v18 }
 0x102   :  { %v320_v22 = vadd.f32 %v372_v39, %v308_v20 }
 0x103   :  { %vm326_vm8 = vcmp.gt.f32.partialorder %v321_v21, 0.0  ;;  %v331_v23 = vmul.f32 0.2, %v321_v21 }
 0x104   :  { %vm325_vm9 = vcmp.gt.f32.partialorder %v320_v22, 0.0  ;;  %v330_v24 = vmul.f32 0.2, %v320_v22 }
 0x105   :  { %v336_v25 = vsel %vm326_vm8, %v321_v21, %v331_v23 }
 0x106   :  { %v335_v26 = vsel %vm325_vm9, %v320_v22, %v330_v24  ;;  %341 = vst [vmem:[%s536_s3 + $0x20] sm:$0x3] %v336_v25 }
 0x107   :  { %340 = vst [vmem:[%s536_s3 + $0x18] sm:$0xff] %v335_v26 }

</bundles_post_ra>
